<compile_context>
chip_gen: v5e
topology: v5e:2x2
jax: 0.10.0
libtpu: 0.0.40
codegen_flags: <defaults>
</compile_context>

<pallas_src>
import numpy as np
import jax
import jax.numpy as jnp
from jax.experimental import pallas as pl
from jax.experimental.pallas import tpu as pltpu

NUM_CLASS = 32
LANE = 128
SUBLANE = 8
_NEUTRAL_LOGIT = -1e4   # BCE(x=-1e4, t=0) == 0 exactly in f32 (exp underflows to 0)

TEMPLATE = {'01': [1, 2, 3, 4, 5, 6, 7, 8, 9, 10, 11, 12, 13, 14], '01_2': [1, 3, 4, 5, 6, 7, 11, 14],
            '02': [1, 3, 4, 5, 6, 7, 11, 14], '03': [6], '04': [6, 27], '05': [2, 3, 26, 32],
            '06': [1, 2, 3, 4, 6, 7, 11, 16, 17],
            '07': [6, 1, 3, 2, 7, 4, 5, 11, 14, 18, 19, 12, 13, 20, 21, 23, 24],
            '08': [6, 2, 3, 1, 11], '09': [1, 2, 3, 4, 5, 6, 7, 8, 9, 11, 12, 13, 14, 21, 22],
            '12': [6, 21, 16, 17, 2, 3], '13': [6, 2, 3, 1, 11, 8, 9, 7, 4, 5, 12, 13, 25],
            '10_03': [6, 27], '10_06': [30], '10_07': [11, 28], '10_08': [15, 29],
            '10_09': [1], '10_10': [31], '14': [1, 2, 3, 4, 6, 7, 11], '21': [1, 2, 3, 6, 11]}


def _round_up(a, b):
    return -(-a // b) * b


def _bce_with_logits(x, t):
    # numerically stable: max(x,0) - x*t + log(1 + exp(-|x|))
    return jnp.maximum(x, 0.0) - x * t + jnp.log1p(jnp.exp(-jnp.abs(x)))


# ---------------------------------------------------------------------------
# Large-spatial path: scalar-prefetch row gather straight from HBM (only the
# selected (b, organ) rows are touched), spatial axis tiled with cdiv + mask.
# ---------------------------------------------------------------------------
def _bce_rows_large(x3, t3, row_idx, n_sel, S, NS, *, max_spatial_tile):
    n_rows = int(row_idx.shape[0])            # padded to even for 2-TC (v7x) balance
    TS = min(max_spatial_tile, _round_up(NS, SUBLANE))   # multiple of 8 always
    n_j = pl.cdiv(NS, TS)
    needs_mask = (n_j * TS != NS)             # static: last tile partial / rounded up
    inv_s = 1.0 / float(S)

    def kernel(idx_ref, x_ref, t_ref, o_ref, acc_ref):
        j = pl.program_id(1)

        @pl.when(j == 0)
        def _():
            acc_ref[...] = jnp.zeros_like(acc_ref)

        x = x_ref[0].astype(jnp.float32)      # (TS, 128)
        t = t_ref[0].astype(jnp.float32)
        bce = _bce_with_logits(x, t)
        if needs_mask:
            chunk = jax.lax.broadcasted_iota(jnp.int32, (TS, LANE), 0) + j * TS
            bce = jnp.where(chunk < NS, bce, 0.0)
        # fold this tile into a single-vreg accumulator: TS/8 VPU adds, 1 vreg RMW
        acc_ref[...] += jnp.sum(bce.reshape(TS // SUBLANE, SUBLANE, LANE), axis=0)

        @pl.when(j == pl.num_programs(1) - 1)
        def _():
            mean = jnp.sum(acc_ref[...]) * inv_s      # one (8,128) XLU reduce, finalize only
            o_ref[...] = jnp.broadcast_to(mean, o_ref.shape)

    elems = n_rows * NS * LANE
    ce = pl.CostEstimate(
        flops=8 * elems, transcendentals=2 * elems,
        bytes_accessed=elems * (x3.dtype.itemsize + t3.dtype.itemsize) + n_rows * LANE * 4)

    out = pl.pallas_call(
        kernel,
        out_shape=jax.ShapeDtypeStruct((n_rows, 1, LANE), jnp.float32),
        grid_spec=pltpu.PrefetchScalarGridSpec(
            num_scalar_prefetch=1,
            grid=(n_rows, n_j),                                   # spatial reduction last
            in_specs=[
                pl.BlockSpec((1, TS, LANE), lambda i, j, idx: (idx[i], j, 0)),
                pl.BlockSpec((1, TS, LANE), lambda i, j, idx: (idx[i], j, 0)),
            ],
            out_specs=pl.BlockSpec((1, 1, LANE), lambda i, j, idx: (i, 0, 0)),
            scratch_shapes=[pltpu.VMEM((SUBLANE, LANE), jnp.float32)],
        ),
        compiler_params=pltpu.CompilerParams(
            dimension_semantics=("parallel", "arbitrary")),       # rows shard across TCs
        cost_estimate=ce,
    )(row_idx, x3, t3)
    return out[:n_sel, 0, 0]


# ---------------------------------------------------------------------------
# Small-spatial fast path: pre-gather selected rows and process several rows per
# grid step to amortize the ~0.35us per-step overhead (extra gather traffic is
# negligible at small S).
# ---------------------------------------------------------------------------
def _bce_rows_small(x3, t3, row_idx, n_sel, S, NS, *, rows_per_step=8):
    TR = rows_per_step
    n_rows = _round_up(n_sel, TR)
    if n_rows != n_sel:      # pad with duplicates of row 0; dropped on the host side
        pad = jnp.full((n_rows - n_sel,), row_idx[0], dtype=row_idx.dtype)
        row_idx = jnp.concatenate([row_idx, pad])
    xg = jnp.take(x3, row_idx, axis=0)        # (n_rows, NS, 128) contiguous
    tg = jnp.take(t3, row_idx, axis=0)
    inv_s = 1.0 / float(S)

    def kernel(x_ref, t_ref, o_ref):
        for r in range(TR):                   # static unroll: 2-D tile per row
            x = x_ref[r].astype(jnp.float32)  # (NS, 128)
            t = t_ref[r].astype(jnp.float32)
            bce = _bce_with_logits(x, t)
            o_ref[r] = jnp.broadcast_to(jnp.sum(bce) * inv_s, (1, LANE))

    elems = n_rows * NS * LANE
    ce = pl.CostEstimate(
        flops=8 * elems, transcendentals=2 * elems,
        bytes_accessed=elems * (xg.dtype.itemsize + tg.dtype.itemsize) + n_rows * LANE * 4)

    out = pl.pallas_call(
        kernel,
        out_shape=jax.ShapeDtypeStruct((n_rows, 1, LANE), jnp.float32),
        grid=(n_rows // TR,),
        in_specs=[
            pl.BlockSpec((TR, NS, LANE), lambda i: (i, 0, 0)),
            pl.BlockSpec((TR, NS, LANE), lambda i: (i, 0, 0)),
        ],
        out_specs=pl.BlockSpec((TR, 1, LANE), lambda i: (i, 0, 0)),
        compiler_params=pltpu.CompilerParams(dimension_semantics=("parallel",)),
        cost_estimate=ce,
    )(xg, tg)
    return out[:n_sel, 0, 0]


def selected_row_bce_means(predict, target, row_idx, *, max_spatial_tile=8192,
                           small_ns_threshold=512, rows_per_step=8):
    """predict/target: (B, C, *spatial) logits / labels (any float/bf16/int dtype; upcast
    to f32 in-kernel — supply binary labels as bf16/int8 to halve target HBM reads).
    row_idx: (n_sel,) int32 flat row indices (b*C + c).
    Returns (n_sel,) f32: mean BCE-with-logits over the spatial dims per selected row."""
    assert predict.shape == target.shape, 'predict & target shape do not match'
    B, C = predict.shape[0], predict.shape[1]
    S = int(np.prod(predict.shape[2:]))
    R = B * C
    n_sel = int(row_idx.shape[0])
    assert n_sel > 0, "empty organ selection"

    xf = predict.reshape(R, S)
    tf = target.reshape(R, S)
    S_pad = _round_up(S, LANE)
    if S_pad != S:
        # Neutral padding (logit=-1e4, label=0) contributes exactly 0 BCE, so no in-kernel
        # mask is needed for the lane tail.  (This copies the array; only when S%128 != 0.)
        xf = jnp.pad(xf, ((0, 0), (0, S_pad - S)), constant_values=_NEUTRAL_LOGIT)
        tf = jnp.pad(tf, ((0, 0), (0, S_pad - S)), constant_values=0)
    NS = S_pad // LANE
    x3 = xf.reshape(R, NS, LANE)
    t3 = tf.reshape(R, NS, LANE)

    if NS <= small_ns_threshold:
        return _bce_rows_small(x3, t3, row_idx, n_sel, S, NS, rows_per_step=rows_per_step)

    # v7x: pad the selected-row list to an even count so the parallel row axis splits
    # evenly across the two TensorCores (one extra row of HBM traffic, dropped below).
    if n_sel % 2:
        row_idx = jnp.concatenate([row_idx, row_idx[:1]])
    max_ts = max(SUBLANE, _round_up(max_spatial_tile, SUBLANE))
    return _bce_rows_large(x3, t3, row_idx, n_sel, S, NS, max_spatial_tile=max_ts)


# ---------------------------------------------------------------------------
# Host-side template/name logic (Python strings -> static selected-row list).
# TODO(synk): string parsing / dict lookup has no Pallas equivalent; kept on host.
# TODO(synk): distinct (n_sel, spatial) combinations recompile the pallas_call;
#             bucket/pad row_idx with per-row weights if that becomes a problem.
# ---------------------------------------------------------------------------
def _template_key(nm):
    dataset_index = int(nm[0:2])
    if dataset_index == 10:
        return nm[0:2] + '_' + nm[17:19]
    elif dataset_index == 1:
        return '01_2' if int(nm[-2:]) >= 60 else '01'
    else:
        return nm[0:2]


def multi_bce_loss(predict, target, name, template, num_classes=NUM_CLASS, **kernel_kwargs):
    assert predict.shape[2:] == target.shape[2:], 'predict & target shape do not match'
    B, C = predict.shape[0], predict.shape[1]
    sel = []
    for b in range(B):
        for organ in template[_template_key(name[b])]:
            sel.append(b * C + (organ - 1))
    assert len(sel) > 0, "no organs selected for this batch"
    row_idx = jnp.asarray(np.asarray(sel, dtype=np.int32))
    per_row = selected_row_bce_means(predict, target, row_idx, **kernel_kwargs)
    return jnp.sum(per_row) / float(len(sel))


if __name__ == "__main__":
    key = jax.random.PRNGKey(0)
    kx, kt = jax.random.split(key)

    def reference_loss(predict, target, names):
        x = predict.astype(jnp.float32)
        t = target.astype(jnp.float32)
        elem = jnp.maximum(x, 0.0) - x * t + jnp.log1p(jnp.exp(-jnp.abs(x)))
        per_class = elem.reshape(x.shape[0], x.shape[1], -1).mean(axis=-1)
        vals = []
        for b in range(len(names)):
            for organ in TEMPLATE[_template_key(names[b])]:
                vals.append(per_class[b, organ - 1])
        return jnp.stack(vals).mean()

    # names exercising the '07' path and the '10_xx' path (chars 17:19 == '03')
    names = ["07_liver_case_0001", "10" + "x" * 15 + "03_case"]

    # --- Test 1: small-spatial fast path (rows batched per grid step) -------------
    B, C, H, W = 2, NUM_CLASS, 16, 16
    predict = jax.random.normal(kx, (B, C, H, W), dtype=jnp.float32)
    # binary labels supplied as bf16: exact for {0,1}, halves target HBM reads in-kernel
    target = (jax.random.uniform(kt, (B, C, H, W)) > 0.5).astype(jnp.bfloat16)
    loss = multi_bce_loss(predict, target, names, TEMPLATE)
    jax.block_until_ready(loss)
    ref = reference_loss(predict, target, names)
    assert jnp.allclose(loss, ref, rtol=1e-5, atol=1e-6), (loss, ref)

    # --- Test 2: gather path (scalar-prefetch row gather, tiled + masked spatial
    #     reduction, H*W not a multiple of 128, odd n_sel padded to even) ----------
    H2, W2 = 16, 150                                   # S=2400 -> pad to 2432 -> NS=19
    p2 = jax.random.normal(kx, (B, C, H2, W2), dtype=jnp.float32)
    t2 = (jax.random.uniform(kt, (B, C, H2, W2)) > 0.5).astype(jnp.bfloat16)
    loss2 = multi_bce_loss(p2, t2, names, TEMPLATE,
                           small_ns_threshold=0, max_spatial_tile=8)
    jax.block_until_ready(loss2)
    ref2 = reference_loss(p2, t2, names)
    assert jnp.allclose(loss2, ref2, rtol=1e-5, atol=1e-6), (loss2, ref2)

    print("KERNEL_OK")
</pallas_src>

<mosaic_0001>
module attributes {stable_mosaic.version = 11 : i64} {
  func.func @kernel(%arg0: i32, %arg1: memref<8x2x128xf32, #tpu.memory_space<vmem>>, %arg2: memref<8x2x128xbf16, #tpu.memory_space<vmem>>, %arg3: memref<8x1x128xf32, #tpu.memory_space<vmem>>) attributes {dimension_semantics = [#tpu.dimension_semantics<parallel>], iteration_bounds = array<i64: 3>, scalar_prefetch = 0 : i64, scratch_operands = 0 : i64, tpu.core_type = #tpu.core_type<tc>, window_params = [{transform_indices = @transform_0, window_bounds = array<i64: 8, 2, 128>}, {transform_indices = @transform_1, window_bounds = array<i64: 8, 2, 128>}, {transform_indices = @transform_2, window_bounds = array<i64: 8, 1, 128>}]} {
    %c0 = arith.constant 0 : index
    %c0_0 = arith.constant 0 : index
    %c0_1 = arith.constant 0 : index
    %0 = vector.load %arg1[%c0, %c0_0, %c0_1] : memref<8x2x128xf32, #tpu.memory_space<vmem>>, vector<1x2x128xf32>
    %1 = vector.shape_cast %0 : vector<1x2x128xf32> to vector<2x128xf32>
    %c0_2 = arith.constant 0 : index
    %c0_3 = arith.constant 0 : index
    %c0_4 = arith.constant 0 : index
    %2 = vector.load %arg2[%c0_2, %c0_3, %c0_4] : memref<8x2x128xbf16, #tpu.memory_space<vmem>>, vector<1x2x128xbf16>
    %3 = vector.shape_cast %2 : vector<1x2x128xbf16> to vector<2x128xbf16>
    %4 = arith.extf %3 : vector<2x128xbf16> to vector<2x128xf32>
    %cst = arith.constant 0.000000e+00 : f32
    %5 = vector.broadcast %cst : f32 to vector<2x128xf32>
    %6 = arith.maximumf %1, %5 : vector<2x128xf32>
    %7 = arith.mulf %1, %4 : vector<2x128xf32>
    %8 = arith.subf %6, %7 : vector<2x128xf32>
    %9 = math.absf %1 : vector<2x128xf32>
    %cst_5 = arith.constant 0.000000e+00 : f32
    %10 = vector.broadcast %cst_5 : f32 to vector<2x128xf32>
    %11 = arith.subf %10, %9 : vector<2x128xf32>
    %12 = math.exp %11 : vector<2x128xf32>
    %13 = math.log1p %12 : vector<2x128xf32>
    %14 = arith.addf %8, %13 : vector<2x128xf32>
    %15 = vector.shape_cast %14 : vector<2x128xf32> to vector<1x2x128xf32>
    %cst_6 = arith.constant dense<0.000000e+00> : vector<1xf32>
    %16 = vector.multi_reduction <add>, %15, %cst_6 [1, 2] : vector<1x2x128xf32> to vector<1xf32>
    %17 = vector.shape_cast %16 : vector<1xf32> to vector<1x1x1xf32>
    %18 = vector.extract %17[0, 0, 0] : f32 from vector<1x1x1xf32>
    %cst_7 = arith.constant 3.906250e-03 : f32
    %19 = arith.mulf %18, %cst_7 : f32
    %20 = vector.broadcast %19 : f32 to vector<1x128xf32>
    %c0_8 = arith.constant 0 : index
    %c0_9 = arith.constant 0 : index
    %c0_10 = arith.constant 0 : index
    %21 = vector.load %arg3[%c0_8, %c0_9, %c0_10] : memref<8x1x128xf32, #tpu.memory_space<vmem>>, vector<1x1x128xf32>
    %22 = vector.shape_cast %21 : vector<1x1x128xf32> to vector<1x128xf32>
    %23 = vector.shape_cast %20 : vector<1x128xf32> to vector<1x1x128xf32>
    tpu.vector_store %arg3[%c0_8, %c0_9, %c0_10], %23 {strides = array<i32>} : memref<8x1x128xf32, #tpu.memory_space<vmem>>, vector<1x1x128xf32>,
    %c1 = arith.constant 1 : index
    %c0_11 = arith.constant 0 : index
    %c0_12 = arith.constant 0 : index
    %24 = vector.load %arg1[%c1, %c0_11, %c0_12] : memref<8x2x128xf32, #tpu.memory_space<vmem>>, vector<1x2x128xf32>
    %25 = vector.shape_cast %24 : vector<1x2x128xf32> to vector<2x128xf32>
    %c1_13 = arith.constant 1 : index
    %c0_14 = arith.constant 0 : index
    %c0_15 = arith.constant 0 : index
    %26 = vector.load %arg2[%c1_13, %c0_14, %c0_15] : memref<8x2x128xbf16, #tpu.memory_space<vmem>>, vector<1x2x128xbf16>
    %27 = vector.shape_cast %26 : vector<1x2x128xbf16> to vector<2x128xbf16>
    %28 = arith.extf %27 : vector<2x128xbf16> to vector<2x128xf32>
    %cst_16 = arith.constant 0.000000e+00 : f32
    %29 = vector.broadcast %cst_16 : f32 to vector<2x128xf32>
    %30 = arith.maximumf %25, %29 : vector<2x128xf32>
    %31 = arith.mulf %25, %28 : vector<2x128xf32>
    %32 = arith.subf %30, %31 : vector<2x128xf32>
    %33 = math.absf %25 : vector<2x128xf32>
    %cst_17 = arith.constant 0.000000e+00 : f32
    %34 = vector.broadcast %cst_17 : f32 to vector<2x128xf32>
    %35 = arith.subf %34, %33 : vector<2x128xf32>
    %36 = math.exp %35 : vector<2x128xf32>
    %37 = math.log1p %36 : vector<2x128xf32>
    %38 = arith.addf %32, %37 : vector<2x128xf32>
    %39 = vector.shape_cast %38 : vector<2x128xf32> to vector<1x2x128xf32>
    %cst_18 = arith.constant dense<0.000000e+00> : vector<1xf32>
    %40 = vector.multi_reduction <add>, %39, %cst_18 [1, 2] : vector<1x2x128xf32> to vector<1xf32>
    %41 = vector.shape_cast %40 : vector<1xf32> to vector<1x1x1xf32>
    %42 = vector.extract %41[0, 0, 0] : f32 from vector<1x1x1xf32>
    %cst_19 = arith.constant 3.906250e-03 : f32
    %43 = arith.mulf %42, %cst_19 : f32
    %44 = vector.broadcast %43 : f32 to vector<1x128xf32>
    %c1_20 = arith.constant 1 : index
    %c0_21 = arith.constant 0 : index
    %c0_22 = arith.constant 0 : index
    %45 = vector.load %arg3[%c1_20, %c0_21, %c0_22] : memref<8x1x128xf32, #tpu.memory_space<vmem>>, vector<1x1x128xf32>
    %46 = vector.shape_cast %45 : vector<1x1x128xf32> to vector<1x128xf32>
    %47 = vector.shape_cast %44 : vector<1x128xf32> to vector<1x1x128xf32>
    tpu.vector_store %arg3[%c1_20, %c0_21, %c0_22], %47 {strides = array<i32>} : memref<8x1x128xf32, #tpu.memory_space<vmem>>, vector<1x1x128xf32>,
    %c2 = arith.constant 2 : index
    %c0_23 = arith.constant 0 : index
    %c0_24 = arith.constant 0 : index
    %48 = vector.load %arg1[%c2, %c0_23, %c0_24] : memref<8x2x128xf32, #tpu.memory_space<vmem>>, vector<1x2x128xf32>
    %49 = vector.shape_cast %48 : vector<1x2x128xf32> to vector<2x128xf32>
    %c2_25 = arith.constant 2 : index
    %c0_26 = arith.constant 0 : index
    %c0_27 = arith.constant 0 : index
    %50 = vector.load %arg2[%c2_25, %c0_26, %c0_27] : memref<8x2x128xbf16, #tpu.memory_space<vmem>>, vector<1x2x128xbf16>
    %51 = vector.shape_cast %50 : vector<1x2x128xbf16> to vector<2x128xbf16>
    %52 = arith.extf %51 : vector<2x128xbf16> to vector<2x128xf32>
    %cst_28 = arith.constant 0.000000e+00 : f32
    %53 = vector.broadcast %cst_28 : f32 to vector<2x128xf32>
    %54 = arith.maximumf %49, %53 : vector<2x128xf32>
    %55 = arith.mulf %49, %52 : vector<2x128xf32>
    %56 = arith.subf %54, %55 : vector<2x128xf32>
    %57 = math.absf %49 : vector<2x128xf32>
    %cst_29 = arith.constant 0.000000e+00 : f32
    %58 = vector.broadcast %cst_29 : f32 to vector<2x128xf32>
    %59 = arith.subf %58, %57 : vector<2x128xf32>
    %60 = math.exp %59 : vector<2x128xf32>
    %61 = math.log1p %60 : vector<2x128xf32>
    %62 = arith.addf %56, %61 : vector<2x128xf32>
    %63 = vector.shape_cast %62 : vector<2x128xf32> to vector<1x2x128xf32>
    %cst_30 = arith.constant dense<0.000000e+00> : vector<1xf32>
    %64 = vector.multi_reduction <add>, %63, %cst_30 [1, 2] : vector<1x2x128xf32> to vector<1xf32>
    %65 = vector.shape_cast %64 : vector<1xf32> to vector<1x1x1xf32>
    %66 = vector.extract %65[0, 0, 0] : f32 from vector<1x1x1xf32>
    %cst_31 = arith.constant 3.906250e-03 : f32
    %67 = arith.mulf %66, %cst_31 : f32
    %68 = vector.broadcast %67 : f32 to vector<1x128xf32>
    %c2_32 = arith.constant 2 : index
    %c0_33 = arith.constant 0 : index
    %c0_34 = arith.constant 0 : index
    %69 = vector.load %arg3[%c2_32, %c0_33, %c0_34] : memref<8x1x128xf32, #tpu.memory_space<vmem>>, vector<1x1x128xf32>
    %70 = vector.shape_cast %69 : vector<1x1x128xf32> to vector<1x128xf32>
    %71 = vector.shape_cast %68 : vector<1x128xf32> to vector<1x1x128xf32>
    tpu.vector_store %arg3[%c2_32, %c0_33, %c0_34], %71 {strides = array<i32>} : memref<8x1x128xf32, #tpu.memory_space<vmem>>, vector<1x1x128xf32>,
    %c3 = arith.constant 3 : index
    %c0_35 = arith.constant 0 : index
    %c0_36 = arith.constant 0 : index
    %72 = vector.load %arg1[%c3, %c0_35, %c0_36] : memref<8x2x128xf32, #tpu.memory_space<vmem>>, vector<1x2x128xf32>
    %73 = vector.shape_cast %72 : vector<1x2x128xf32> to vector<2x128xf32>
    %c3_37 = arith.constant 3 : index
    %c0_38 = arith.constant 0 : index
    %c0_39 = arith.constant 0 : index
    %74 = vector.load %arg2[%c3_37, %c0_38, %c0_39] : memref<8x2x128xbf16, #tpu.memory_space<vmem>>, vector<1x2x128xbf16>
    %75 = vector.shape_cast %74 : vector<1x2x128xbf16> to vector<2x128xbf16>
    %76 = arith.extf %75 : vector<2x128xbf16> to vector<2x128xf32>
    %cst_40 = arith.constant 0.000000e+00 : f32
    %77 = vector.broadcast %cst_40 : f32 to vector<2x128xf32>
    %78 = arith.maximumf %73, %77 : vector<2x128xf32>
    %79 = arith.mulf %73, %76 : vector<2x128xf32>
    %80 = arith.subf %78, %79 : vector<2x128xf32>
    %81 = math.absf %73 : vector<2x128xf32>
    %cst_41 = arith.constant 0.000000e+00 : f32
    %82 = vector.broadcast %cst_41 : f32 to vector<2x128xf32>
    %83 = arith.subf %82, %81 : vector<2x128xf32>
    %84 = math.exp %83 : vector<2x128xf32>
    %85 = math.log1p %84 : vector<2x128xf32>
    %86 = arith.addf %80, %85 : vector<2x128xf32>
    %87 = vector.shape_cast %86 : vector<2x128xf32> to vector<1x2x128xf32>
    %cst_42 = arith.constant dense<0.000000e+00> : vector<1xf32>
    %88 = vector.multi_reduction <add>, %87, %cst_42 [1, 2] : vector<1x2x128xf32> to vector<1xf32>
    %89 = vector.shape_cast %88 : vector<1xf32> to vector<1x1x1xf32>
    %90 = vector.extract %89[0, 0, 0] : f32 from vector<1x1x1xf32>
    %cst_43 = arith.constant 3.906250e-03 : f32
    %91 = arith.mulf %90, %cst_43 : f32
    %92 = vector.broadcast %91 : f32 to vector<1x128xf32>
    %c3_44 = arith.constant 3 : index
    %c0_45 = arith.constant 0 : index
    %c0_46 = arith.constant 0 : index
    %93 = vector.load %arg3[%c3_44, %c0_45, %c0_46] : memref<8x1x128xf32, #tpu.memory_space<vmem>>, vector<1x1x128xf32>
    %94 = vector.shape_cast %93 : vector<1x1x128xf32> to vector<1x128xf32>
    %95 = vector.shape_cast %92 : vector<1x128xf32> to vector<1x1x128xf32>
    tpu.vector_store %arg3[%c3_44, %c0_45, %c0_46], %95 {strides = array<i32>} : memref<8x1x128xf32, #tpu.memory_space<vmem>>, vector<1x1x128xf32>,
    %c4 = arith.constant 4 : index
    %c0_47 = arith.constant 0 : index
    %c0_48 = arith.constant 0 : index
    %96 = vector.load %arg1[%c4, %c0_47, %c0_48] : memref<8x2x128xf32, #tpu.memory_space<vmem>>, vector<1x2x128xf32>
    %97 = vector.shape_cast %96 : vector<1x2x128xf32> to vector<2x128xf32>
    %c4_49 = arith.constant 4 : index
    %c0_50 = arith.constant 0 : index
    %c0_51 = arith.constant 0 : index
    %98 = vector.load %arg2[%c4_49, %c0_50, %c0_51] : memref<8x2x128xbf16, #tpu.memory_space<vmem>>, vector<1x2x128xbf16>
    %99 = vector.shape_cast %98 : vector<1x2x128xbf16> to vector<2x128xbf16>
    %100 = arith.extf %99 : vector<2x128xbf16> to vector<2x128xf32>
    %cst_52 = arith.constant 0.000000e+00 : f32
    %101 = vector.broadcast %cst_52 : f32 to vector<2x128xf32>
    %102 = arith.maximumf %97, %101 : vector<2x128xf32>
    %103 = arith.mulf %97, %100 : vector<2x128xf32>
    %104 = arith.subf %102, %103 : vector<2x128xf32>
    %105 = math.absf %97 : vector<2x128xf32>
    %cst_53 = arith.constant 0.000000e+00 : f32
    %106 = vector.broadcast %cst_53 : f32 to vector<2x128xf32>
    %107 = arith.subf %106, %105 : vector<2x128xf32>
    %108 = math.exp %107 : vector<2x128xf32>
    %109 = math.log1p %108 : vector<2x128xf32>
    %110 = arith.addf %104, %109 : vector<2x128xf32>
    %111 = vector.shape_cast %110 : vector<2x128xf32> to vector<1x2x128xf32>
    %cst_54 = arith.constant dense<0.000000e+00> : vector<1xf32>
    %112 = vector.multi_reduction <add>, %111, %cst_54 [1, 2] : vector<1x2x128xf32> to vector<1xf32>
    %113 = vector.shape_cast %112 : vector<1xf32> to vector<1x1x1xf32>
    %114 = vector.extract %113[0, 0, 0] : f32 from vector<1x1x1xf32>
    %cst_55 = arith.constant 3.906250e-03 : f32
    %115 = arith.mulf %114, %cst_55 : f32
    %116 = vector.broadcast %115 : f32 to vector<1x128xf32>
    %c4_56 = arith.constant 4 : index
    %c0_57 = arith.constant 0 : index
    %c0_58 = arith.constant 0 : index
    %117 = vector.load %arg3[%c4_56, %c0_57, %c0_58] : memref<8x1x128xf32, #tpu.memory_space<vmem>>, vector<1x1x128xf32>
    %118 = vector.shape_cast %117 : vector<1x1x128xf32> to vector<1x128xf32>
    %119 = vector.shape_cast %116 : vector<1x128xf32> to vector<1x1x128xf32>
    tpu.vector_store %arg3[%c4_56, %c0_57, %c0_58], %119 {strides = array<i32>} : memref<8x1x128xf32, #tpu.memory_space<vmem>>, vector<1x1x128xf32>,
    %c5 = arith.constant 5 : index
    %c0_59 = arith.constant 0 : index
    %c0_60 = arith.constant 0 : index
    %120 = vector.load %arg1[%c5, %c0_59, %c0_60] : memref<8x2x128xf32, #tpu.memory_space<vmem>>, vector<1x2x128xf32>
    %121 = vector.shape_cast %120 : vector<1x2x128xf32> to vector<2x128xf32>
    %c5_61 = arith.constant 5 : index
    %c0_62 = arith.constant 0 : index
    %c0_63 = arith.constant 0 : index
    %122 = vector.load %arg2[%c5_61, %c0_62, %c0_63] : memref<8x2x128xbf16, #tpu.memory_space<vmem>>, vector<1x2x128xbf16>
    %123 = vector.shape_cast %122 : vector<1x2x128xbf16> to vector<2x128xbf16>
    %124 = arith.extf %123 : vector<2x128xbf16> to vector<2x128xf32>
    %cst_64 = arith.constant 0.000000e+00 : f32
    %125 = vector.broadcast %cst_64 : f32 to vector<2x128xf32>
    %126 = arith.maximumf %121, %125 : vector<2x128xf32>
    %127 = arith.mulf %121, %124 : vector<2x128xf32>
    %128 = arith.subf %126, %127 : vector<2x128xf32>
    %129 = math.absf %121 : vector<2x128xf32>
    %cst_65 = arith.constant 0.000000e+00 : f32
    %130 = vector.broadcast %cst_65 : f32 to vector<2x128xf32>
    %131 = arith.subf %130, %129 : vector<2x128xf32>
    %132 = math.exp %131 : vector<2x128xf32>
    %133 = math.log1p %132 : vector<2x128xf32>
    %134 = arith.addf %128, %133 : vector<2x128xf32>
    %135 = vector.shape_cast %134 : vector<2x128xf32> to vector<1x2x128xf32>
    %cst_66 = arith.constant dense<0.000000e+00> : vector<1xf32>
    %136 = vector.multi_reduction <add>, %135, %cst_66 [1, 2] : vector<1x2x128xf32> to vector<1xf32>
    %137 = vector.shape_cast %136 : vector<1xf32> to vector<1x1x1xf32>
    %138 = vector.extract %137[0, 0, 0] : f32 from vector<1x1x1xf32>
    %cst_67 = arith.constant 3.906250e-03 : f32
    %139 = arith.mulf %138, %cst_67 : f32
    %140 = vector.broadcast %139 : f32 to vector<1x128xf32>
    %c5_68 = arith.constant 5 : index
    %c0_69 = arith.constant 0 : index
    %c0_70 = arith.constant 0 : index
    %141 = vector.load %arg3[%c5_68, %c0_69, %c0_70] : memref<8x1x128xf32, #tpu.memory_space<vmem>>, vector<1x1x128xf32>
    %142 = vector.shape_cast %141 : vector<1x1x128xf32> to vector<1x128xf32>
    %143 = vector.shape_cast %140 : vector<1x128xf32> to vector<1x1x128xf32>
    tpu.vector_store %arg3[%c5_68, %c0_69, %c0_70], %143 {strides = array<i32>} : memref<8x1x128xf32, #tpu.memory_space<vmem>>, vector<1x1x128xf32>,
    %c6 = arith.constant 6 : index
    %c0_71 = arith.constant 0 : index
    %c0_72 = arith.constant 0 : index
    %144 = vector.load %arg1[%c6, %c0_71, %c0_72] : memref<8x2x128xf32, #tpu.memory_space<vmem>>, vector<1x2x128xf32>
    %145 = vector.shape_cast %144 : vector<1x2x128xf32> to vector<2x128xf32>
    %c6_73 = arith.constant 6 : index
    %c0_74 = arith.constant 0 : index
    %c0_75 = arith.constant 0 : index
    %146 = vector.load %arg2[%c6_73, %c0_74, %c0_75] : memref<8x2x128xbf16, #tpu.memory_space<vmem>>, vector<1x2x128xbf16>
    %147 = vector.shape_cast %146 : vector<1x2x128xbf16> to vector<2x128xbf16>
    %148 = arith.extf %147 : vector<2x128xbf16> to vector<2x128xf32>
    %cst_76 = arith.constant 0.000000e+00 : f32
    %149 = vector.broadcast %cst_76 : f32 to vector<2x128xf32>
    %150 = arith.maximumf %145, %149 : vector<2x128xf32>
    %151 = arith.mulf %145, %148 : vector<2x128xf32>
    %152 = arith.subf %150, %151 : vector<2x128xf32>
    %153 = math.absf %145 : vector<2x128xf32>
    %cst_77 = arith.constant 0.000000e+00 : f32
    %154 = vector.broadcast %cst_77 : f32 to vector<2x128xf32>
    %155 = arith.subf %154, %153 : vector<2x128xf32>
    %156 = math.exp %155 : vector<2x128xf32>
    %157 = math.log1p %156 : vector<2x128xf32>
    %158 = arith.addf %152, %157 : vector<2x128xf32>
    %159 = vector.shape_cast %158 : vector<2x128xf32> to vector<1x2x128xf32>
    %cst_78 = arith.constant dense<0.000000e+00> : vector<1xf32>
    %160 = vector.multi_reduction <add>, %159, %cst_78 [1, 2] : vector<1x2x128xf32> to vector<1xf32>
    %161 = vector.shape_cast %160 : vector<1xf32> to vector<1x1x1xf32>
    %162 = vector.extract %161[0, 0, 0] : f32 from vector<1x1x1xf32>
    %cst_79 = arith.constant 3.906250e-03 : f32
    %163 = arith.mulf %162, %cst_79 : f32
    %164 = vector.broadcast %163 : f32 to vector<1x128xf32>
    %c6_80 = arith.constant 6 : index
    %c0_81 = arith.constant 0 : index
    %c0_82 = arith.constant 0 : index
    %165 = vector.load %arg3[%c6_80, %c0_81, %c0_82] : memref<8x1x128xf32, #tpu.memory_space<vmem>>, vector<1x1x128xf32>
    %166 = vector.shape_cast %165 : vector<1x1x128xf32> to vector<1x128xf32>
    %167 = vector.shape_cast %164 : vector<1x128xf32> to vector<1x1x128xf32>
    tpu.vector_store %arg3[%c6_80, %c0_81, %c0_82], %167 {strides = array<i32>} : memref<8x1x128xf32, #tpu.memory_space<vmem>>, vector<1x1x128xf32>,
    %c7 = arith.constant 7 : index
    %c0_83 = arith.constant 0 : index
    %c0_84 = arith.constant 0 : index
    %168 = vector.load %arg1[%c7, %c0_83, %c0_84] : memref<8x2x128xf32, #tpu.memory_space<vmem>>, vector<1x2x128xf32>
    %169 = vector.shape_cast %168 : vector<1x2x128xf32> to vector<2x128xf32>
    %c7_85 = arith.constant 7 : index
    %c0_86 = arith.constant 0 : index
    %c0_87 = arith.constant 0 : index
    %170 = vector.load %arg2[%c7_85, %c0_86, %c0_87] : memref<8x2x128xbf16, #tpu.memory_space<vmem>>, vector<1x2x128xbf16>
    %171 = vector.shape_cast %170 : vector<1x2x128xbf16> to vector<2x128xbf16>
    %172 = arith.extf %171 : vector<2x128xbf16> to vector<2x128xf32>
    %cst_88 = arith.constant 0.000000e+00 : f32
    %173 = vector.broadcast %cst_88 : f32 to vector<2x128xf32>
    %174 = arith.maximumf %169, %173 : vector<2x128xf32>
    %175 = arith.mulf %169, %172 : vector<2x128xf32>
    %176 = arith.subf %174, %175 : vector<2x128xf32>
    %177 = math.absf %169 : vector<2x128xf32>
    %cst_89 = arith.constant 0.000000e+00 : f32
    %178 = vector.broadcast %cst_89 : f32 to vector<2x128xf32>
    %179 = arith.subf %178, %177 : vector<2x128xf32>
    %180 = math.exp %179 : vector<2x128xf32>
    %181 = math.log1p %180 : vector<2x128xf32>
    %182 = arith.addf %176, %181 : vector<2x128xf32>
    %183 = vector.shape_cast %182 : vector<2x128xf32> to vector<1x2x128xf32>
    %cst_90 = arith.constant dense<0.000000e+00> : vector<1xf32>
    %184 = vector.multi_reduction <add>, %183, %cst_90 [1, 2] : vector<1x2x128xf32> to vector<1xf32>
    %185 = vector.shape_cast %184 : vector<1xf32> to vector<1x1x1xf32>
    %186 = vector.extract %185[0, 0, 0] : f32 from vector<1x1x1xf32>
    %cst_91 = arith.constant 3.906250e-03 : f32
    %187 = arith.mulf %186, %cst_91 : f32
    %188 = vector.broadcast %187 : f32 to vector<1x128xf32>
    %c7_92 = arith.constant 7 : index
    %c0_93 = arith.constant 0 : index
    %c0_94 = arith.constant 0 : index
    %189 = vector.load %arg3[%c7_92, %c0_93, %c0_94] : memref<8x1x128xf32, #tpu.memory_space<vmem>>, vector<1x1x128xf32>
    %190 = vector.shape_cast %189 : vector<1x1x128xf32> to vector<1x128xf32>
    %191 = vector.shape_cast %188 : vector<1x128xf32> to vector<1x1x128xf32>
    tpu.vector_store %arg3[%c7_92, %c0_93, %c0_94], %191 {strides = array<i32>} : memref<8x1x128xf32, #tpu.memory_space<vmem>>, vector<1x1x128xf32>,
    return
  }
  func.func @transform_0(%arg0: i32) -> (i32, i32, i32) {
    %c0_i32 = arith.constant 0 : i32
    %c0_i32_0 = arith.constant 0 : i32
    %c0_i32_1 = arith.constant 0 : i32
    return %arg0, %c0_i32, %c0_i32_0 : i32, i32, i32
  }
  func.func @transform_1(%arg0: i32) -> (i32, i32, i32) {
    %c0_i32 = arith.constant 0 : i32
    %c0_i32_0 = arith.constant 0 : i32
    %c0_i32_1 = arith.constant 0 : i32
    return %arg0, %c0_i32, %c0_i32_0 : i32, i32, i32
  }
  func.func @transform_2(%arg0: i32) -> (i32, i32, i32) {
    %c0_i32 = arith.constant 0 : i32
    %c0_i32_0 = arith.constant 0 : i32
    %c0_i32_1 = arith.constant 0 : i32
    return %arg0, %c0_i32, %c0_i32_0 : i32, i32, i32
  }
}

</mosaic_0001>

<bundles_post_ra>
// kernel: tpu_custom_call.1
= control target key start
LH: loop header
LB: loop body
LE: loop exit
PB: predicated region body
PF: predicated region fallthrough
CT: control target
= control target key end

     0   :  { %7 = vsyncpa [#allocation3], 0  ;;  %s1180_s0 = inlined_call_operand.hbm [shape: f32[24,2,128], index: 0, kind: input, shape index: {}]   ;;  %s1181_s1 = inlined_call_operand.hbm [shape: bf16[24,2,128], index: 1, kind: input, shape index: {}]   ;;  %s1182_s2 = inlined_call_operand.hbm [shape: f32[24,1,128], index: 2, kind: output, shape index: {}]  }
   0x1   :  { %9 = vsyncpa [#allocation3 + $0x1], 0 }
   0x2   :  { %10 = vsyncpa [#allocation6], 0 }
   0x3   :  { %12 = vsyncpa [#allocation6 + $0x1], 0 }
   0x4   :  { %13 = vsyncpa [#allocation4], 0 }
   0x5   :  { %15 = vsyncpa [#allocation4 + $0x1], 0  ;;  %s901_s9 = smov 0   ;;  %s903_s10 = smov 0  }
   0x6   :  { %s905_s11 = smov 0   ;;  %s907_s12 = smov 0  }
   0x7 LB: > { %s922_s13 = sadd.s32 4294967295, %s878_s12   ;;  %s605_s14 = sadd.s32 4294967294, %s878_s12   ;;  %s878_s12 = sphi %s907_s12, %s1202_s12   ;;  %s874_s11 = sphi %s905_s11, %s1201_s11   ;;  %s870_s10 = sphi %s903_s10, %s1200_s10   ;;  %s866_s9 = sphi %s901_s9, %s1199_s9  }
   0x8   : > { %s926_s15 = sadd.s32 1, %s878_s12   ;;  %s28_s16 = sadd.s32 1, %s874_s11 }
   0x9   : > { %s25_s17 = ssub.s32 %s878_s12, %s926_s15  ;;  %p35_p0 = scmp.ne.s32.totalorder %s874_s11, %s870_s10 }
   0xa   : > { %p26_p1 = scmp.eq.s32.totalorder %s25_s17, 0  ;;  %p36_p2 = scmp.eq.s32.totalorder %s878_s12, 0 }
   0xb   : > { %p41_p3 = scmp.ne.s32.totalorder %s870_s10, %s866_s9  ;;  %p42_p4 = scmp.eq.s32.totalorder %s922_s13, 0 }
   0xc   : > { %s938_s18 = scalar_select %p26_p1, %s874_s11, %s28_s16  }
   0xd   : > { %p940_p5 = por %p36_p2, %p35_p0  ;;  %p944_p6 = por %p42_p4, %p41_p3 }
   0xe   : > { %p91_p7 = scmp.eq.s32.totalorder %s922_s13, 2  ;;  %p97_p8 = scmp.eq.s32.totalorder %s605_s14, 2 }
   0xf   : > { %p676_p9 = scmp.lt.s32.totalorder %s878_s12, 3  ;;  %s959_s23 = sand.u32 1, %s874_s11  }
  0x10   : > { %p950_p10 = por %p91_p7, %p35_p0  ;;  %p954_p11 = por %p97_p8, %p41_p3 }
  0x11   : > { %s642_s24 = sshll.u32 %s878_s12, 4  ;;  %s608_s25 = sshll.u32 %s959_s23, 4 }
  0x12   : > { %s126_s28 = scalar_lea.hbm %s1180_s0, %s642_s24  ;;  %s121_s30 = scalar_lea.vmem [#allocation2], %s608_s25 }
  0x13   : > { %s127_s29 = sshll.u32 %s126_s28, 4  ;;  %s129_s3 = sshll.u32 %s121_s30, 4  ;;  %s128_s29 = int_to_ptr.hbm [resolvable:$true] %s127_s29  ;;  %s130_s3 = int_to_ptr.vmem [resolvable:$true] %s129_s3 }
  0x14   : > { %p968_p12 = pnand %p676_p9, %p940_p5  ;;  %p613_p13 = scmp.ge.s32.totalorder %s878_s12, 1 }
  0x15   : > { %p158_p0 = scmp.lt.s32.totalorder %s878_s12, 4  ;;  %s118_s5 = scalar_lea.sflag [#allocation3], %s959_s23 }
  0x16   : > { %s748_s6 = sshra.s32 %s128_s29, 4  ;;  %p752_p2 = pneg %p968_p12  ;;  %s749_s6 = int_to_ptr.hbm [resolvable:$true] %s748_s6 }
  0x17   : > { %s750_s7 = scalar_lea.hbm %s749_s6, 16  ;;  %s755_s16 = scalar_lea.hbm %s1180_s0, 48 }
  0x18   : > { %p751_p1 = scmp.ne.s32.totalorder %s749_s6, %s750_s7  ;;  %p756_p5 = scmp.lt.s32.totalorder %s749_s6, %s1180_s0 }
  0x19   : > { %p757_p7 = scmp.lt.s32.totalorder %s755_s16, %s750_s7 }
  0x1a   : > { %p753_p3 = pnand %p752_p2, %p751_p1 }
  0x1b   : > { %p758_p8 = por %p757_p7, %p756_p5 }
  0x1c   : > { %p754_p4 = pneg %p753_p3 }
  0x1e   : > { %p759_p9 = pnand %p758_p8, %p754_p4 }
  0x20   : > { %762 = shalt.err (!%p759_p9)
}
  0x21   : > { %s880_s24 = smov 32   ;;  %s881_s25 = smov 2  }
  0x22   : > { %668 = dma.hbm_to_vmem [thread:$0]  (!%p968_p12), %s128_s29, 256, %s130_s3, %s118_s5, %s880_s24, %s880_s24, %s881_s25  }
  0x23   : > { %p992_p1 = pnand %p613_p13, %p158_p0  ;;  %s611_s27 = sshll.u32 %s959_s23, 3 }
  0x24   : > { %s612_s28 = sshll.u32 %s878_s12, 3  ;;  %s143_s14 = scalar_lea.vmem [#allocation5], %s611_s27 }
  0x25   : > { %s147_s7 = scalar_lea.hbm %s1181_s1, %s612_s28  ;;  %s150_s16 = sshll.u32 %s143_s14, 4  ;;  %s151_s16 = int_to_ptr.vmem [resolvable:$true] %s150_s16 }
  0x26   : > { %s148_s8 = sshll.u32 %s147_s7, 4  ;;  %s140_s17 = scalar_lea.sflag [#allocation6], %s959_s23  ;;  %s149_s8 = int_to_ptr.hbm [resolvable:$true] %s148_s8 }
  0x27   : > { %s778_s19 = sshra.s32 %s149_s8, 4  ;;  %s785_s24 = scalar_lea.hbm %s1181_s1, 24  ;;  %s779_s19 = int_to_ptr.hbm [resolvable:$true] %s778_s19 }
  0x28   : > { %s780_s29 = scalar_lea.hbm %s779_s19, 8  ;;  %p786_p4 = scmp.lt.s32.totalorder %s779_s19, %s1181_s1 }
  0x29   : > { %p781_p3 = scmp.ne.s32.totalorder %s779_s19, %s780_s29  ;;  %p787_p5 = scmp.lt.s32.totalorder %s785_s24, %s780_s29 }
  0x2b   : > { %p783_p13 = pnand %p781_p3, %p752_p2  ;;  %p788_p7 = por %p787_p5, %p786_p4 }
  0x2d   : > { %p784_p0 = pneg %p783_p13 }
  0x2f   : > { %p789_p8 = pnand %p788_p7, %p784_p0 }
  0x31   : > { %792 = shalt.err (!%p789_p8)
}
  0x32   : > { %s882_s23 = smov 16   ;;  %s883_s27 = smov 1  }
  0x33   : > { %671 = dma.hbm_to_vmem [thread:$0]  (!%p968_p12), %s149_s8, 128, %s151_s16, %s140_s17, %s882_s23, %s882_s23, %s883_s27  }
  0x34   : > { %162 = sbr.rel (%p992_p1) target bundleno = 303 (0x12f), region = 28  ;;  %s1016_s30 = sand.u32 (!%p992_p1), 1, %s870_s10  }
  0x35   : > { %s614_s6 = sshll.u32 (!%p992_p1), %s1016_s30, 4  ;;  %s165_s7 = scalar_lea.sflag (!%p992_p1), [#allocation3], %s1016_s30 }
  0x36   : > { %s1020_s14 = scalar_lea.vmem (!%p992_p1), [#allocation2], %s614_s6 }
  0x39   : > { %853 = dma.done.wait (%p944_p6), %s165_s7, 256  }
  0x3a   : > { %855 = vsyncadd (%p944_p6), %s165_s7, 4294967040  ;;  %s615_s4 = sshll.u32 %s1016_s30, 3  ;;  %s175_s26 = scalar_lea.sflag [#allocation6], %s1016_s30 }
  0x3b   : > { %s1030_s8 = scalar_lea.vmem [#allocation5], %s615_s4 }
  0x3c   : > { %857 = dma.done.wait (%p944_p6), %s175_s26, 128  }
  0x3d   : > { %859 = vsyncadd (%p944_p6), %s175_s26, 4294967168  ;;  %v620_v0 = vld [vmem:[%s1020_s14 + $0x4] sm:$0x3]  ;;  %v621_v1 = vld [vmem:[%s1030_s8 + $0x2] sm:$0x1]  ;;  %vm228_vm0 = vcmask 1041408  }
  0x3e   : > { %v208_v2 = vld [vmem:[%s1020_s14] sm:$0x3]  ;;  %v286_v3 = vand.u32 2147483647, %v620_v0  ;;  %v282_v5 = vunpack.c.l.bf16 %v621_v1  ;;  %v626_v7 = vld [vmem:[%s1020_s14 + $0x8] sm:$0x3] }
  0x3f   : > { %v209_v4 = vld [vmem:[%s1030_s8] sm:$0x1]  ;;  %v214_v6 = vand.u32 2147483647, %v208_v2  ;;  %v627_v8 = vld [vmem:[%s1030_s8 + $0x4] sm:$0x1] }
  0x40   : > { %v287_v9 = vsub.f32 0.0, %v286_v3  ;;  %v210_v10 = vunpack.c.l.bf16 %v209_v4  ;;  %v354_v11 = vunpack.c.l.bf16 %v627_v8  ;;  %v624_v12 = vld [vmem:[%s1030_s8 + $0x3] sm:$0x1]  ;;  %v358_v14 = vand.u32 2147483647, %v626_v7  ;;  %s1134_s17 = scalar_lea.vmem [#allocation7], %s615_s4 }
  0x41   : > { %v215_v13 = vsub.f32 0.0, %v214_v6  ;;  %v623_v15 = vld [vmem:[%s1020_s14 + $0x6] sm:$0x3]  ;;  %v318_v16 = vunpack.c.l.bf16 %v624_v12  ;;  %v283_v17 = vmax.f32 %v620_v0, 0.0  ;;  %v211_v19 = vmax.f32 %v208_v2, 0.0  ;;  %s639_s7 = sshll.u32 %s922_s13, 3 }
  0x42   : > { %v288_v18 = vmul.f32 1.442695, %v287_v9  ;;  %v617_v20 = vld [vmem:[%s1020_s14 + $0x2] sm:$0x3]  ;;  %v284_v21 = vmul.f32 %v620_v0, %v282_v5  ;;  %v355_v23 = vmax.f32 %v626_v7, 0.0  ;;  %v359_v24 = vsub.f32 0.0, %v358_v14 }
  0x43   : > { %v216_v22 = vmul.f32 1.442695, %v215_v13  ;;  %v618_v25 = vld [vmem:[%s1030_s8 + $0x1] sm:$0x1]  ;;  %v212_v26 = vmul.f32 %v210_v10, %v208_v2  ;;  %v356_v27 = vmul.f32 %v626_v7, %v354_v11  ;;  %v322_v28 = vand.u32 2147483647, %v623_v15 }
  0x44   : > { %716 = vpow2.f32 %v288_v18  ;;  %v1047_v29 = vld [vmem:[%s1020_s14 + $0xa] sm:$0x3]  ;;  %v360_v30 = vmul.f32 1.442695, %v359_v24  ;;  %v319_v31 = vmax.f32 %v623_v15, 0.0  ;;  %v320_v32 = vmul.f32 %v623_v15, %v318_v16 }
  0x45   : > { %718 = vpow2.f32 %v216_v22  ;;  %v323_v33 = vsub.f32 0.0, %v322_v28  ;;  %v246_v34 = vunpack.c.l.bf16 %v618_v25  ;;  %v250_v35 = vand.u32 2147483647, %v617_v20  ;;  %v630_v36 = vld [vmem:[%s1030_s8 + $0x5] sm:$0x1] }
  0x46   : > { %720 = vpow2.f32 %v360_v30  ;;  %v394_v37 = vand.u32 2147483647, %v1047_v29  ;;  %v1051_v38 = vsub.f32 %v283_v17, %v284_v21  ;;  %v1053_v39 = vsub.f32 %v211_v19, %v212_v26  ;;  %v1060_v46 = vld [vmem:[%s1020_s14 + $0xe] sm:$0x3]  ;;  %v1063_v51 = vld [vmem:[%s1030_s8 + $0x7] sm:$0x1] }
  0x47   : > { %v324_v40 = vmul.f32 1.442695, %v323_v33  ;;  %v251_v41 = vsub.f32 0.0, %v250_v35  ;;  %v1055_v42 = vsub.f32 %v355_v23, %v356_v27  ;;  %v1057_v43 = vsub.f32 %v319_v31, %v320_v32  ;;  %v1083_v19 = vld [vmem:[%s1020_s14 + $0xc] sm:$0x3]  ;;  %s506_s14 = sshll.u32 %s1134_s17, 4  ;;  %s1147_s14 = int_to_ptr.vmem [resolvable:$true] %s506_s14 }
  0x48   : > { %v247_v44 = vmax.f32 %v617_v20, 0.0  ;;  %v395_v45 = vsub.f32 0.0, %v394_v37  ;;  %v248_v48 = vmul.f32 %v617_v20, %v246_v34  ;;  %v390_v50 = vunpack.c.l.bf16 %v630_v36 }
  0x49   : > { %722 = vpow2.f32 %v324_v40  ;;  %v252_v49 = vmul.f32 1.442695, %v251_v41  ;;  %v391_v55 = vmax.f32 %v1047_v29, 0.0  ;;  %v466_v59 = vand.u32 2147483647, %v1060_v46 }
  0x4a   : > { %v717_v47 = vpop.eup %716  ;;  %v396_v56 = vmul.f32 1.442695, %v395_v45  ;;  %v462_v63 = vunpack.c.l.bf16 %v1063_v51  ;;  %v1068_v5 = vsub.f32 %v247_v44, %v248_v48  ;;  %v1071_v7 = vmul.f32 %v1047_v29, %v390_v50 }
  0x4b   : > { %v719_v52 = vpop.eup %718  ;;  %v290_v53 = vadd.f32 1.0, %v717_v47  ;;  %v293_v54 = vmul.f32 -0.5, %v717_v47  ;;  %724 = vpow2.f32 %v252_v49  ;;  %v296_v61 = vand.u32 2147483647, %v717_v47 }
  0x4c   : > { %v218_v57 = vadd.f32 1.0, %v719_v52  ;;  %v221_v58 = vmul.f32 -0.5, %v719_v52  ;;  %v721_v60 = vpop.eup %720  ;;  %v224_v62 = vand.u32 2147483647, %v719_v52  ;;  %v463_v8 = vmax.f32 %v1060_v46, 0.0 }
  0x4d   : > { %726 = vlog2.f32 %v290_v53  ;;  %v294_v0 = vadd.f32 1.0, %v293_v54  ;;  %v362_v2 = vadd.f32 1.0, %v721_v60  ;;  %v365_v3 = vmul.f32 -0.5, %v721_v60 }
  0x4e   : > { %728 = vlog2.f32 %v218_v57  ;;  %v222_v1 = vadd.f32 1.0, %v221_v58  ;;  %v368_v4 = vand.u32 2147483647, %v721_v60  ;;  %v467_v9 = vsub.f32 0.0, %v466_v59 }
  0x4f   : > { %730 = vpow2.f32 %v396_v56  ;;  %v723_v6 = vpop.eup %722  ;;  %vm1074_vm1 = vcmp.lt.f32.partialorder %v296_v61, 0.0004427343  ;;  %v366_v11 = vadd.f32 1.0, %v365_v3  ;;  %v295_v15 = vmul.f32 %v717_v47, %v294_v0 }
  0x50   : > { %732 = vlog2.f32 %v362_v2  ;;  %v326_v12 = vadd.f32 1.0, %v723_v6  ;;  %v329_v13 = vmul.f32 -0.5, %v723_v6  ;;  %v223_v16 = vmul.f32 %v719_v52, %v222_v1 }
  0x51   : > { %v725_v14 = vpop.eup %724  ;;  %vm1078_vm2 = vcmp.lt.f32.partialorder %v224_v62, 0.0004427343  ;;  %v468_v18 = vmul.f32 1.442695, %v467_v9  ;;  %vm1085_vm3 = vcmp.lt.f32.partialorder %v368_v4, 0.0004427343  ;;  %v367_v31 = vmul.f32 %v721_v60, %v366_v11 }
  0x52   : > { %734 = vlog2.f32 %v326_v12  ;;  %v332_v22 = vand.u32 2147483647, %v723_v6  ;;  %v254_v23 = vadd.f32 1.0, %v725_v14  ;;  %v330_v26 = vadd.f32 1.0, %v329_v13 }
  0x53   : > { %v727_v20 = vpop.eup %726  ;;  %v257_v27 = vmul.f32 -0.5, %v725_v14  ;;  %736 = vpow2.f32 %v468_v18  ;;  %v430_v32 = vand.u32 2147483647, %v1083_v19  ;;  %v260_v45 = vand.u32 2147483647, %v725_v14 }
  0x54   : > { %v729_v24 = vpop.eup %728  ;;  %v292_v25 = vmul.f32 0.6931472, %v727_v20  ;;  %738 = vlog2.f32 %v254_v23  ;;  %v331_v48 = vmul.f32 %v723_v6, %v330_v26  ;;  %vm1096_vm4 = vcmp.lt.f32.partialorder %v332_v22, 0.0004427343  ;;  %v633_v22 = vld [vmem:[%s1030_s8 + $0x6] sm:$0x1]  ;;  %s505_s8 = scalar_lea.hbm %s1182_s2, %s639_s7 }
  0x55   : > { %v731_v28 = vpop.eup %730  ;;  %v220_v30 = vmul.f32 0.6931472, %v729_v24  ;;  %v258_v35 = vadd.f32 1.0, %v257_v27  ;;  %vm1105_vm5 = vcmp.lt.f32.partialorder %v260_v45, 0.0004427343  ;;  %v464_v62 = vmul.f32 %v1060_v46, %v462_v63 }
  0x56   : > { %v733_v33 = vpop.eup %732  ;;  %v298_v34 = vsel %vm1074_vm1, %v295_v15, %v292_v25  ;;  %v398_v36 = vadd.f32 1.0, %v731_v28  ;;  %v401_v37 = vmul.f32 -0.5, %v731_v28  ;;  %v404_v59 = vand.u32 2147483647, %v731_v28 }
  0x57   : > { %v299_v40 = vadd.f32 %v298_v34, %v1051_v38  ;;  %v226_v41 = vsel %vm1078_vm2, %v223_v16, %v220_v30  ;;  %v364_v44 = vmul.f32 0.6931472, %v733_v33  ;;  %v259_v38 = vmul.f32 %v725_v14, %v258_v35 }
  0x58   : > { %v227_v47 = vadd.f32 %v226_v41, %v1053_v39  ;;  %740 = vlog2.f32 %v398_v36  ;;  %v735_v50 = vpop.eup %734  ;;  %v402_v54 = vadd.f32 1.0, %v401_v37  ;;  %v431_v4 = vsub.f32 0.0, %v430_v32 }
  0x59   : > { %v300_v52 = vsel %vm228_vm0, %v299_v40, 0.0  ;;  %v370_v53 = vsel %vm1085_vm3, %v367_v31, %v364_v44  ;;  %v737_v56 = vpop.eup %736  ;;  %v328_v58 = vmul.f32 0.6931472, %v735_v50  ;;  %v393_v9 = vsub.f32 %v391_v55, %v1071_v7 }
  0x5a   : > { %301 = vadd.xlane.f32.xlu1 %v300_v52  ;;  %v229_v57 = vsel %vm228_vm0, %v227_v47, 0.0  ;;  %v371_v39 = vadd.f32 %v370_v53, %v1055_v42  ;;  %v739_v60 = vpop.eup %738  ;;  %v470_v0 = vadd.f32 1.0, %v737_v56  ;;  %v473_v1 = vmul.f32 -0.5, %v737_v56 }
  0x5b   : > { %230 = vadd.xlane.f32.xlu0 %v229_v57  ;;  %v334_v3 = vsel %vm1096_vm4, %v331_v48, %v328_v58  ;;  %v256_v42 = vmul.f32 0.6931472, %v739_v60  ;;  %v403_v10 = vmul.f32 %v731_v28, %v402_v54  ;;  %vm405_vm6 = vcmp.lt.f32.partialorder %v404_v59, 0.0004427343 }
  0x5c   : > { %v372_v2 = vsel %vm228_vm0, %v371_v39, 0.0  ;;  %v335_v6 = vadd.f32 %v334_v3, %v1057_v43  ;;  %742 = vlog2.f32 %v470_v0  ;;  %v474_v11 = vadd.f32 1.0, %v473_v1 }
  0x5d   : > { %373 = vadd.xlane.f32.xlu2 %v372_v2  ;;  %v262_v63 = vsel %vm1105_vm5, %v259_v38, %v256_v42  ;;  %v432_v12 = vmul.f32 1.442695, %v431_v4  ;;  %v476_v43 = vand.u32 2147483647, %v737_v56  ;;  %v465_v18 = vsub.f32 %v463_v8, %v464_v62 }
  0x5e   : > { %v741_v51 = vpop.eup %740  ;;  %v336_v13 = vsel %vm228_vm0, %v335_v6, 0.0  ;;  %v263_v14 = vadd.f32 %v262_v63, %v1068_v5  ;;  %v475_v16 = vmul.f32 %v737_v56, %v474_v11  ;;  %v426_v25 = vunpack.c.l.bf16 %v633_v22 }
  0x5f   : > { %v400_v15 = vmul.f32 0.6931472, %v741_v51  ;;  %744 = vpow2.f32 %v432_v12  ;;  %vm477_vm7 = vcmp.lt.f32.partialorder %v476_v43, 0.0004427343  ;;  %v427_v46 = vmax.f32 %v1083_v19, 0.0 }
  0x60   : > { %v264_v29 = vsel %vm228_vm0, %v263_v14, 0.0  ;;  %v428_v8 = vmul.f32 %v1083_v19, %v426_v25 }
  0x61   : > { %v406_v55 = vsel %vm405_vm6, %v403_v10, %v400_v15 }
  0x62   : > { %337 = vadd.xlane.f32.xlu1 %v336_v13  ;;  %v407_v7 = vadd.f32 %v406_v55, %v393_v9  ;;  %v743_v17 = vpop.eup %742  ;;  %v429_v34 = vsub.f32 %v427_v46, %v428_v8 }
  0x63   : > { %265 = vadd.xlane.f32.xlu0 %v264_v29  ;;  %v472_v21 = vmul.f32 0.6931472, %v743_v17 }
  0x64   : > { %v408_v20 = vsel %vm228_vm0, %v407_v7, 0.0 }
  0x65   : > { %409 = vadd.xlane.f32.xlu2 %v408_v20  ;;  %v745_v5 = vpop.eup %744  ;;  %v478_v23 = vsel %vm477_vm7, %v475_v16, %v472_v21 }
  0x66   : > { %v479_v24 = vadd.f32 %v478_v23, %v465_v18  ;;  %v434_v26 = vadd.f32 1.0, %v745_v5  ;;  %v437_v27 = vmul.f32 -0.5, %v745_v5  ;;  %v440_v31 = vand.u32 2147483647, %v745_v5 }
  0x68   : > { %v480_v28 = vsel %vm228_vm0, %v479_v24, 0.0  ;;  %746 = vlog2.f32 %v434_v26  ;;  %v438_v30 = vadd.f32 1.0, %v437_v27  ;;  %vm441_vm8 = vcmp.lt.f32.partialorder %v440_v31, 0.0004427343 }
  0x6a   : > { %481 = vadd.xlane.f32.xlu1 %v480_v28  ;;  %v439_v32 = vmul.f32 %v745_v5, %v438_v30 }
  0x6e   : > { %v747_v33 = vpop.eup %746 }
  0x6f   : > { %v436_v35 = vmul.f32 0.6931472, %v747_v33 }
  0x71   : > { %v442_v36 = vsel %vm441_vm8, %v439_v32, %v436_v35 }
  0x72   : > { %v443_v37 = vadd.f32 %v442_v36, %v429_v34 }
  0x74   : > { %v444_v40 = vsel %vm228_vm0, %v443_v37, 0.0 }
  0x75   : > { %445 = vadd.xlane.f32.xlu0 %v444_v40 }
  0xcd   : > { %v302_v41 = vpop.xlane.xlu1 %301 }
  0xce   : > { %v303_v44 = vrot.slane %v302_v41, 4  ;;  %v231_v45 = vpop.xlane.xlu0 %230 }
  0xcf   : > { %v232_v47 = vrot.slane %v231_v45, 4 }
  0xd0   : > { %v374_v48 = vpop.xlane.xlu2 %373  ;;  %v304_v52 = vadd.f32 %v303_v44, %v302_v41 }
  0xd1   : > { %v233_v49 = vadd.f32 %v232_v47, %v231_v45  ;;  %v375_v50 = vrot.slane %v374_v48, 4 }
  0xd2   : > { %v305_v56 = vrot.slane %v304_v52, 2 }
  0xd3   : > { %v234_v19 = vrot.slane %v233_v49, 2  ;;  %v376_v53 = vadd.f32 %v375_v50, %v374_v48 }
  0xd4   : > { %v306_v42 = vadd.f32 %v305_v56, %v304_v52 }
  0xd5   : > { %v338_v38 = vpop.xlane.xlu1 %337  ;;  %v235_v54 = vadd.f32 %v234_v19, %v233_v49  ;;  %v377_v60 = vrot.slane %v376_v53, 2 }
  0xd6   : > { %v339_v57 = vrot.slane %v338_v38, 4  ;;  %v266_v39 = vpop.xlane.xlu0 %265  ;;  %v307_v12 = vrot.slane %v306_v42, 1 }
  0xd7   : > { %v267_v58 = vrot.slane %v266_v39, 4  ;;  %v236_v59 = vrot.slane %v235_v54, 1  ;;  %v378_v10 = vadd.f32 %v377_v60, %v376_v53 }
  0xd8   : > { %v340_v61 = vadd.f32 %v339_v57, %v338_v38  ;;  %v410_v62 = vpop.xlane.xlu2 %409  ;;  %v308_v17 = vadd.f32 %v307_v12, %v306_v42 }
  0xd9   : > { %v268_v0 = vadd.f32 %v267_v58, %v266_v39  ;;  %v411_v1 = vrot.slane %v410_v62, 4  ;;  %v237_v2 = vadd.f32 %v236_v59, %v235_v54  ;;  %v379_v29 = vrot.slane %v378_v10, 1 }
  0xda   : > { %v341_v3 = vrot.slane %v340_v61, 2 }
  0xdb   : > { %v269_v4 = vrot.slane %v268_v0, 2  ;;  %v412_v6 = vadd.f32 %v411_v1, %v410_v62  ;;  %643 = vpush %v237_v2  ;;  %v380_v21 = vadd.f32 %v379_v29, %v378_v10 }
  0xdc   : > { %v342_v9 = vadd.f32 %v341_v3, %v340_v61 }
  0xdd   : > { %v413_v51 = vrot.slane %v412_v6, 2  ;;  %v482_v63 = vpop.xlane.xlu1 %481  ;;  %v270_v11 = vadd.f32 %v269_v4, %v268_v0 }
  0xde   : > { %v343_v13 = vrot.slane %v342_v9, 1  ;;  %v483_v15 = vrot.slane %v482_v63, 4 }
  0xdf   : > { %v414_v14 = vadd.f32 %v413_v51, %v412_v6  ;;  %v271_v43 = vrot.slane %v270_v11, 1 }
  0xe0   : > { %v344_v7 = vadd.f32 %v343_v13, %v342_v9  ;;  %v484_v18 = vadd.f32 %v483_v15, %v482_v63 }
  0xe1   : > { %v272_v55 = vadd.f32 %v271_v43, %v270_v11  ;;  %v415_v16 = vrot.slane %v414_v14, 1 }
  0xe2   : > { %v485_v22 = vrot.slane %v484_v18, 2 }
  0xe3   : > { %645 = vpush %v272_v55  ;;  %v416_v20 = vadd.f32 %v415_v16, %v414_v14 }
  0xe4   : > { %647 = vpush %v308_v17  ;;  %v486_v24 = vadd.f32 %v485_v22, %v484_v18 }
  0xe5   : > { %649 = vpush %v344_v7 }
  0xe6   : > { %651 = vpush %v380_v21  ;;  %v487_v27 = vrot.slane %v486_v24, 1 }
  0xe7   : > { %653 = vpush %v416_v20 }
  0xe8   : > { %v446_v5 = vpop.xlane.xlu0 %445  ;;  %v488_v46 = vadd.f32 %v487_v27, %v486_v24 }
  0xe9   : > { %v447_v23 = vrot.slane %v446_v5, 4 }
  0xeb   : > { %v448_v25 = vadd.f32 %v447_v23, %v446_v5 }
  0xed   : > { %v449_v26 = vrot.slane %v448_v25, 2 }
  0xef   : > { %v450_v28 = vadd.f32 %v449_v26, %v448_v25 }
  0xf1   : > { %v451_v30 = vrot.slane %v450_v28, 1 }
  0xf3   : > { %v452_v8 = vadd.f32 %v451_v30, %v450_v28 }
  0xf5   : > { %655 = vpush %v452_v8 }
  0xf6   : > { %657 = vpush %v488_v46 }
 0x10c   : > { %s644_s20 = spop %643 }
 0x10d   : > { %s239_s16 = smul.f32 0.00390625, %s644_s20  ;;  %s508_s20 = sshll.u32 %s505_s8, 4  ;;  %s509_s20 = int_to_ptr.hbm [resolvable:$true] %s508_s20 }
 0x10e   : > { %s822_s13 = sshra.s32 %s509_s20, 4  ;;  %s823_s13 = int_to_ptr.hbm [resolvable:$true] %s822_s13 }
 0x10f   : > { %v240_v31 = vstv %s239_s16  ;;  %p829_p9 = scmp.lt.s32.totalorder %s823_s13, %s1182_s2 }
 0x110   : > { %241 = vst [vmem:[%s1134_s17] sm:$0x1] %v240_v31 }
 0x114   : > { %s646_s19 = spop %645 }
 0x115   : > { %s274_s29 = smul.f32 0.00390625, %s646_s19  ;;  %s648_s3 = spop %647 }
 0x116   : > { %s310_s5 = smul.f32 0.00390625, %s648_s3  ;;  %s650_s24 = spop %649 }
 0x117   : > { %v275_v32 = vstv %s274_s29  ;;  %s346_s25 = smul.f32 0.00390625, %s650_s24  ;;  %s652_s28 = spop %651 }
 0x118   : > { %619 = vst [vmem:[%s1134_s17 + $0x1] sm:$0x1] %v275_v32  ;;  %v311_v33 = vstv %s310_s5  ;;  %s382_s23 = smul.f32 0.00390625, %s652_s28  ;;  %s654_s27 = spop %653 }
 0x119   : > { %622 = vst [vmem:[%s1134_s17 + $0x2] sm:$0x1] %v311_v33  ;;  %v347_v34 = vstv %s346_s25  ;;  %s418_s6 = smul.f32 0.00390625, %s654_s27  ;;  %s495_s5 = scalar_lea.sflag [#allocation4], %s1016_s30 }
 0x11a   : > { %625 = vst [vmem:[%s1134_s17 + $0x3] sm:$0x1] %v347_v34  ;;  %v383_v35 = vstv %s382_s23  ;;  %s824_s24 = scalar_lea.hbm %s823_s13, 8  ;;  %s828_s23 = scalar_lea.hbm %s1182_s2, 24 }
 0x11b   : > { %628 = vst [vmem:[%s1134_s17 + $0x4] sm:$0x1] %v383_v35  ;;  %v419_v36 = vstv %s418_s6  ;;  %p825_p6 = scmp.ne.s32.totalorder %s823_s13, %s824_s24  ;;  %p830_p1 = scmp.lt.s32.totalorder %s828_s23, %s824_s24 }
 0x11c   : > { %631 = vst [vmem:[%s1134_s17 + $0x5] sm:$0x1] %v419_v36 }
 0x11d   : > { %p826_p12 = pnand %p825_p6, %p950_p10  ;;  %p831_p3 = por %p830_p1, %p829_p9 }
 0x11f   : > { %p827_p2 = pneg %p826_p12 }
 0x121   : > { %p832_p13 = pnand %p831_p3, %p827_p2 }
 0x126   : > { %s656_s16 = spop %655 }
 0x127   : > { %s454_s19 = smul.f32 0.00390625, %s656_s16  ;;  %s658_s29 = spop %657 }
 0x128   : > { %s490_s3 = smul.f32 0.00390625, %s658_s29 }
 0x129   : > { %v455_v37 = vstv %s454_s19 }
 0x12a   : > { %634 = vst [vmem:[%s1134_s17 + $0x6] sm:$0x1] %v455_v37  ;;  %v491_v40 = vstv %s490_s3 }
 0x12b   : > { %637 = vst [vmem:[%s1134_s17 + $0x7] sm:$0x1] %v491_v40 }
 0x12c   : > { %835 = shalt.err (!%p832_p13)
}
 0x12d   : > { %s884_s30 = smov 16   ;;  %s885_s17 = smov 1  }
 0x12e   : > { %663 = dma.vmem_to_hbm [thread:$0]  (%p950_p10), %s1147_s14, 128, %s509_s20, %s495_s5, %s884_s30, %s884_s30, %s885_s17  }
 0x12f PF: > { %p677_p0 = scmp.ge.s32.totalorder %s878_s12, 2  ;;  %s523_s7 = sand.u32 1, %s866_s9  }
 0x130   : > { %s524_s4 = scalar_lea.sflag [#allocation4], %s523_s7 }
 0x131   : > { %p673_p4 = pnand %p677_p0, %p954_p11 }
 0x133   : > { %p674_p5 = pneg %p673_p4 }
 0x135   : > { %861 = dma.done.wait (%p674_p5), %s524_s4, 128  }
 0x136   : > { %863 = vsyncadd (%p674_p5), %s524_s4, 4294967168  ;;  %p18_p7 = scmp.ge.s32.totalorder %s926_s15, 5   ;;  %s1199_s9 = smov %s870_s10 }
 0x137   : > { %s1200_s10 = smov %s874_s11  ;;  %s1201_s11 = smov %s938_s18 }
 0x138   : > { %s1202_s12 = smov %s926_s15  ;;  %20 = sbr.rel (!%p18_p7) target bundleno = 7 (0x7), region = 107 }
 0x13d   :  { %530 = vsyncpa [#allocation3], 1 }
 0x13e   :  { %532 = vsyncpa [#allocation3 + $0x1], 1 }
 0x13f   :  { %533 = vsyncpa [#allocation6], 1 }
 0x140   :  { %535 = vsyncpa [#allocation6 + $0x1], 1 }
 0x141   :  { %536 = vsyncpa [#allocation4], 1 }
 0x142   :  { %538 = vsyncpa [#allocation4 + $0x1], 1 }

</bundles_post_ra>
